<compile_context>
chip_gen: v5e
topology: v5e:2x2
jax: 0.10.0
libtpu: 0.0.40
codegen_flags: <defaults>
</compile_context>

<pallas_src>
from functools import partial
from typing import NamedTuple, Optional, List

import jax
import jax.numpy as jnp
from jax import lax
from jax.experimental import pallas as pl
from jax.experimental.pallas import tpu as pltpu


# ----------------------------- Pallas kernel --------------------------------

def _make_trajectory_kernel(chunk: int, t_last: int):
    """Build a kernel that advances `chunk` time steps per grid iteration."""

    def kernel(t0_ref,                                     # scalar prefetch (SMEM)
               x0_ref, a_ref, exog_ref, scale_ref, noise_ref,   # inputs (VMEM)
               out_ref,                                    # (chunk, bb, hidden) output block
               x_scratch):                                 # VMEM-resident state (bb, hidden)
        c = pl.program_id(1)                               # chunk index (time axis)

        # Initialize the resident state from x0 at the first chunk of each
        # batch split (grid iterates the time axis innermost).
        @pl.when(c == 0)
        def _init():
            x_scratch[...] = x0_ref[...]

        a = a_ref[...]                                     # hoisted: reused chunk times
        scale = scale_ref[...]
        x = x_scratch[...]
        t_base = t0_ref[0] + c * chunk

        # Statically unrolled recurrence over the chunk (LLO sees the whole body).
        for i in range(chunk):
            # exog row for the *previous* state's time index, clamped at horizon
            t_idx = jnp.minimum(t_base + i, t_last)
            exog_row = exog_ref[pl.ds(t_idx, 1), :]        # (1, hidden), resident table
            # mean of p(x_{t+1} | x_t): x @ A + (b + exog_t)   (b pre-folded)
            x = (jnp.dot(x, a, preferred_element_type=jnp.float32)
                 + exog_row + scale * noise_ref[i])        # reparameterized sample
            out_ref[i] = x.astype(out_ref.dtype)

        x_scratch[...] = x

    return kernel


@partial(jax.jit, static_argnames=("steps", "chunk", "split"))
def ar_trajectory(x0, A, exog_plus_b, scale, noise, t0, *, steps, chunk, split):
    """Sample `steps` states of x_{t+1} = x_t @ A + b + exog_t + scale * eps
    in ONE pallas_call (state stays VMEM-resident across time chunks)."""
    batch, hidden = x0.shape
    T = exog_plus_b.shape[0]
    assert steps % chunk == 0, "chunk must divide steps"
    assert batch % split == 0, "split must divide batch"
    bb = batch // split
    nc = steps // chunk

    kernel = _make_trajectory_kernel(chunk, T - 1)

    grid_spec = pltpu.PrefetchScalarGridSpec(
        num_scalar_prefetch=1,                 # t0 lands in SMEM
        grid=(split, nc),                      # (batch split, time chunks)
        in_specs=[
            pl.BlockSpec((bb, hidden), lambda p, c, t0r: (p, 0)),          # x0 (step-0 read)
            pl.BlockSpec((hidden, hidden), lambda p, c, t0r: (0, 0)),      # A: resident
            pl.BlockSpec((T, hidden), lambda p, c, t0r: (0, 0)),           # b+exog table: resident
            pl.BlockSpec((1, hidden), lambda p, c, t0r: (0, 0)),           # scale: resident
            pl.BlockSpec((chunk, bb, hidden), lambda p, c, t0r: (c, p, 0)),  # noise chunk
        ],
        out_specs=pl.BlockSpec((chunk, bb, hidden), lambda p, c, t0r: (c, p, 0)),
        scratch_shapes=[pltpu.VMEM((bb, hidden), jnp.float32)],
    )
    return pl.pallas_call(
        kernel,
        out_shape=jax.ShapeDtypeStruct((steps, batch, hidden), jnp.float32),
        grid_spec=grid_spec,
        compiler_params=pltpu.CompilerParams(
            # batch split is embarrassingly parallel (2 TCs on v7x);
            # the time axis is a sequential recurrence.
            dimension_semantics=("parallel", "arbitrary")),
    )(t0, x0, A, exog_plus_b, scale, noise)


def _pick_chunk(steps: int, hint: int = 8) -> int:
    c = min(hint, steps)
    while steps % c:
        c -= 1
    return c


def _pick_split(batch: int) -> int:
    # two row-groups (one per v7x TensorCore) when each half keeps 8-row sublane alignment
    return 2 if batch % 16 == 0 else 1


# ------------------------ Stochastic-process wrapper ------------------------

class TimeseriesState(NamedTuple):
    time_index: jnp.ndarray          # scalar int32
    values: jnp.ndarray              # (batch, hidden)
    exog: Optional[jnp.ndarray] = None

    def propagate_from(self, values, time_increment=1):
        return TimeseriesState(
            time_index=self.time_index + jnp.int32(time_increment),
            values=values,
            exog=None,
        )


class StochasticProcessPallas:
    """Linear-Gaussian instantiation of StochasticProcess with a fused Pallas hot path."""

    def __init__(self, hidden, exogenous, A, b, scale, init_loc, init_scale):
        self.hidden = hidden
        self.exogenous = exogenous                       # (T, hidden)
        self.A = A                                       # (hidden, hidden)
        self.b = b                                       # (1, hidden)
        self.scale = scale                               # (1, hidden)
        self.init_loc = init_loc                         # (1, hidden)
        self.init_scale = init_scale                     # (1, hidden)
        # one-time host-side fold of the constant offset into the exog table
        self.exog_plus_b = (exogenous + b).astype(jnp.float32)

    @property
    def event_shape(self):
        return (self.hidden,)

    @property
    def n_dim(self):
        return len(self.event_shape)

    @property
    def num_vars(self):
        return self.hidden

    def initial_sample(self, key, batch):
        eps = jax.random.normal(key, (batch, self.hidden), dtype=jnp.float32)
        values = self.init_loc + self.init_scale * eps
        return TimeseriesState(time_index=jnp.int32(0), values=values)

    def forward(self, x: TimeseriesState, key, time_increment: int = 1):
        # exog attach + build_density + density.sample are fused in-kernel.
        # NOTE: stepping one step at a time pays launch + state round-trip per
        # call; prefer sample_states (one pallas_call for the whole trajectory).
        batch = x.values.shape[0]
        noise = jax.random.normal(key, (1, batch, self.hidden), dtype=jnp.float32)
        t0 = jnp.reshape(x.time_index, (1,)).astype(jnp.int32)
        path = ar_trajectory(x.values, self.A, self.exog_plus_b, self.scale,
                             noise, t0, steps=1, chunk=1, split=_pick_split(batch))
        return x.propagate_from(values=path[0], time_increment=time_increment)

    def propagate(self, x, key, time_increment=1):
        return self.forward(x, key, time_increment=time_increment)

    def sample_states(self, steps: int, key, batch) -> List[TimeseriesState]:
        """Whole trajectory in ONE pallas_call (state stays VMEM-resident across chunks)."""
        k_init, k_noise = jax.random.split(key)
        state0 = self.initial_sample(k_init, batch)
        noise = jax.random.normal(k_noise, (steps, batch, self.hidden), dtype=jnp.float32)
        t0 = jnp.reshape(state0.time_index, (1,)).astype(jnp.int32)
        path = ar_trajectory(state0.values, self.A, self.exog_plus_b, self.scale,
                             noise, t0, steps=steps,
                             chunk=_pick_chunk(steps), split=_pick_split(batch))
        states, ti = [], state0.time_index
        for i in range(steps):
            ti = ti + jnp.int32(1)
            states.append(TimeseriesState(time_index=ti, values=path[i]))
        return states


# ---------------------------------- main ------------------------------------

if __name__ == "__main__":
    BATCH = 32     # parallel sample paths (multiple of 16 -> splits across 2 TCs)
    HIDDEN = 128   # lane-dense event dimension (multiple of 128)
    T = 16         # exogenous horizon
    STEPS = 8      # trajectory length

    key = jax.random.PRNGKey(0)
    k_exog, k_A, k_run, k_check = jax.random.split(key, 4)

    # Deterministic "parameters" for the synthetic linear-Gaussian process.
    A = (0.9 * jnp.eye(HIDDEN, dtype=jnp.float32)
         + 0.01 * jax.random.normal(k_A, (HIDDEN, HIDDEN), dtype=jnp.float32))
    b = jnp.full((1, HIDDEN), 0.05, dtype=jnp.float32)
    scale = jnp.full((1, HIDDEN), 0.1, dtype=jnp.float32)
    init_loc = jnp.zeros((1, HIDDEN), dtype=jnp.float32)
    init_scale = jnp.ones((1, HIDDEN), dtype=jnp.float32)
    exogenous = 0.1 * jax.random.normal(k_exog, (T, HIDDEN), dtype=jnp.float32)

    proc = StochasticProcessPallas(HIDDEN, exogenous, A, b, scale,
                                   init_loc, init_scale)

    # --- single forward() step (original hot-path semantics) ---
    k_init, k_step, k_path = jax.random.split(k_run, 3)
    state0 = proc.initial_sample(k_init, BATCH)
    state1 = proc.forward(state0, k_step, time_increment=1)
    jax.block_until_ready(state1.values)
    assert state1.values.shape == (BATCH, HIDDEN)
    assert int(state1.time_index) == 1
    assert bool(jnp.all(jnp.isfinite(state1.values)))

    # --- fused multi-step trajectory (sample_states) ---
    path = proc.sample_states(steps=STEPS, key=k_path, batch=BATCH)
    jax.block_until_ready(path[-1].values)
    assert len(path) == STEPS
    assert path[-1].values.shape == (BATCH, HIDDEN)
    assert int(path[-1].time_index) == STEPS
    assert bool(jnp.all(jnp.isfinite(path[-1].values)))

    # --- correctness check: the fused kernel must reproduce the reference
    #     recurrence x_{t+1} = x_t @ A + b + exog_{min(t0+t, T-1)} + scale*eps_t
    #     when given the SAME noise tensor (start at t0=12 to exercise both the
    #     time-index offset and clamping at the exogenous horizon).
    kx, kn = jax.random.split(k_check)
    x0 = jax.random.normal(kx, (BATCH, HIDDEN), dtype=jnp.float32)
    noise = jax.random.normal(kn, (STEPS, BATCH, HIDDEN), dtype=jnp.float32)
    T0 = 12
    t0_arr = jnp.full((1,), T0, dtype=jnp.int32)
    ker_path = ar_trajectory(x0, A, proc.exog_plus_b, scale, noise, t0_arr,
                             steps=STEPS, chunk=_pick_chunk(STEPS),
                             split=_pick_split(BATCH))
    jax.block_until_ready(ker_path)

    x_ref = x0
    ref_rows = []
    for t in range(STEPS):
        e = proc.exog_plus_b[min(T0 + t, T - 1)]
        x_ref = (jnp.dot(x_ref, A, preferred_element_type=jnp.float32)
                 + e + scale * noise[t])
        ref_rows.append(x_ref)
    ref_path = jnp.stack(ref_rows)

    max_abs = float(jnp.max(jnp.abs(ref_path)))
    max_err = float(jnp.max(jnp.abs(ker_path - ref_path)))
    assert max_err < 3e-2 * max(1.0, max_abs), \
        f"recurrence mismatch: err={max_err}, scale={max_abs}"

    # TODO(synk): pyro-based inference helpers (_pyro_full/_pyro_approximate/
    # _pyro_params_only, do_sample_pyro) and the DistributionModule/BufferIterable
    # abstractions have no Pallas equivalent and are intentionally omitted.
    print("KERNEL_OK")
</pallas_src>

<mosaic_0001>
module attributes {stable_mosaic.version = 11 : i64} {
  func.func @kernel(%arg0: i32, %arg1: i32, %arg2: memref<1xi32, #tpu.memory_space<smem>>, %arg3: memref<16x128xf32, #tpu.memory_space<vmem>>, %arg4: memref<128x128xf32, #tpu.memory_space<vmem>>, %arg5: memref<16x128xf32, #tpu.memory_space<vmem>>, %arg6: memref<1x128xf32, #tpu.memory_space<vmem>>, %arg7: memref<1x16x128xf32, #tpu.memory_space<vmem>>, %arg8: memref<1x16x128xf32, #tpu.memory_space<vmem>>, %arg9: memref<16x128xf32, #tpu.memory_space<vmem>>) attributes {dimension_semantics = [#tpu.dimension_semantics<parallel>, #tpu.dimension_semantics<arbitrary>], iteration_bounds = array<i64: 2, 1>, scalar_prefetch = 1 : i64, scratch_operands = 1 : i64, tpu.core_type = #tpu.core_type<tc>, window_params = [{transform_indices = @transform_0, window_bounds = array<i64: 16, 128>}, {pipeline_mode = #tpu.pipeline_mode<synchronous>, transform_indices = @transform_1, window_bounds = array<i64: 128, 128>}, {pipeline_mode = #tpu.pipeline_mode<synchronous>, transform_indices = @transform_2, window_bounds = array<i64: 16, 128>}, {pipeline_mode = #tpu.pipeline_mode<synchronous>, transform_indices = @transform_3, window_bounds = array<i64: 1, 128>}, {transform_indices = @transform_4, window_bounds = array<i64: 1, 16, 128>}, {transform_indices = @transform_5, window_bounds = array<i64: 1, 16, 128>}]} {
    %c0_i32 = arith.constant 0 : i32
    %0 = arith.cmpi eq, %arg1, %c0_i32 : i32
    %1 = arith.extui %0 : i1 to i32
    %c0_i32_0 = arith.constant 0 : i32
    %2 = arith.cmpi ne, %1, %c0_i32_0 : i32
    scf.if %2 {
      %c0_17 = arith.constant 0 : index
      %c0_18 = arith.constant 0 : index
      %25 = vector.load %arg3[%c0_17, %c0_18] : memref<16x128xf32, #tpu.memory_space<vmem>>, vector<16x128xf32>
      %c0_19 = arith.constant 0 : index
      %c0_20 = arith.constant 0 : index
      %26 = vector.load %arg9[%c0_19, %c0_20] : memref<16x128xf32, #tpu.memory_space<vmem>>, vector<16x128xf32>
      tpu.vector_store %arg9[%c0_19, %c0_20], %25 {strides = array<i32>} : memref<16x128xf32, #tpu.memory_space<vmem>>, vector<16x128xf32>,
    } else {
    }
    %c0 = arith.constant 0 : index
    %c0_1 = arith.constant 0 : index
    %3 = vector.load %arg4[%c0, %c0_1] : memref<128x128xf32, #tpu.memory_space<vmem>>, vector<128x128xf32>
    %c0_2 = arith.constant 0 : index
    %c0_3 = arith.constant 0 : index
    %4 = vector.load %arg6[%c0_2, %c0_3] : memref<1x128xf32, #tpu.memory_space<vmem>>, vector<1x128xf32>
    %c0_4 = arith.constant 0 : index
    %c0_5 = arith.constant 0 : index
    %5 = vector.load %arg9[%c0_4, %c0_5] : memref<16x128xf32, #tpu.memory_space<vmem>>, vector<16x128xf32>
    %c0_6 = arith.constant 0 : index
    %6 = memref.load %arg2[%c0_6] : memref<1xi32, #tpu.memory_space<smem>>
    %c1_i32 = arith.constant 1 : i32
    %7 = arith.muli %arg1, %c1_i32 : i32
    %8 = arith.addi %6, %7 : i32
    %c0_i32_7 = arith.constant 0 : i32
    %9 = arith.addi %8, %c0_i32_7 : i32
    %c15_i32 = arith.constant 15 : i32
    %10 = arith.minsi %9, %c15_i32 : i32
    %11 = arith.index_cast %10 : i32 to index
    %c0_8 = arith.constant 0 : index
    %12 = vector.load %arg5[%11, %c0_8] : memref<16x128xf32, #tpu.memory_space<vmem>>, vector<1x128xf32>
    %cst = arith.constant dense<0.000000e+00> : vector<16x128xf32>
    %13 = tpu.matmul %5, %3, %cst {dimension_numbers = #tpu.dot_dimension_numbers<[1], [0], [0], [1], [0, 0, 1, 1], [], []>} : vector<16x128xf32>, vector<128x128xf32>, vector<16x128xf32> -> vector<16x128xf32>
    %14 = vector.broadcast %12 : vector<1x128xf32> to vector<16x128xf32>
    %15 = arith.addf %13, %14 : vector<16x128xf32>
    %c0_9 = arith.constant 0 : index
    %c0_10 = arith.constant 0 : index
    %c0_11 = arith.constant 0 : index
    %16 = vector.load %arg7[%c0_9, %c0_10, %c0_11] : memref<1x16x128xf32, #tpu.memory_space<vmem>>, vector<1x16x128xf32>
    %17 = vector.shape_cast %16 : vector<1x16x128xf32> to vector<16x128xf32>
    %18 = vector.broadcast %4 : vector<1x128xf32> to vector<16x128xf32>
    %19 = arith.mulf %18, %17 : vector<16x128xf32>
    %20 = arith.addf %15, %19 : vector<16x128xf32>
    %c0_12 = arith.constant 0 : index
    %c0_13 = arith.constant 0 : index
    %c0_14 = arith.constant 0 : index
    %21 = vector.load %arg8[%c0_12, %c0_13, %c0_14] : memref<1x16x128xf32, #tpu.memory_space<vmem>>, vector<1x16x128xf32>
    %22 = vector.shape_cast %21 : vector<1x16x128xf32> to vector<16x128xf32>
    %23 = vector.shape_cast %20 : vector<16x128xf32> to vector<1x16x128xf32>
    tpu.vector_store %arg8[%c0_12, %c0_13, %c0_14], %23 {strides = array<i32>} : memref<1x16x128xf32, #tpu.memory_space<vmem>>, vector<1x16x128xf32>,
    %c0_15 = arith.constant 0 : index
    %c0_16 = arith.constant 0 : index
    %24 = vector.load %arg9[%c0_15, %c0_16] : memref<16x128xf32, #tpu.memory_space<vmem>>, vector<16x128xf32>
    tpu.vector_store %arg9[%c0_15, %c0_16], %20 {strides = array<i32>} : memref<16x128xf32, #tpu.memory_space<vmem>>, vector<16x128xf32>,
    return
  }
  func.func @transform_0(%arg0: i32, %arg1: i32, %arg2: memref<1xi32, #tpu.memory_space<smem>>) -> (i32, i32) {
    %c0_i32 = arith.constant 0 : i32
    %c0_i32_0 = arith.constant 0 : i32
    return %arg0, %c0_i32 : i32, i32
  }
  func.func @transform_1(%arg0: i32, %arg1: i32, %arg2: memref<1xi32, #tpu.memory_space<smem>>) -> (i32, i32) {
    %c0_i32 = arith.constant 0 : i32
    %c0_i32_0 = arith.constant 0 : i32
    %c0_i32_1 = arith.constant 0 : i32
    return %c0_i32, %c0_i32_0 : i32, i32
  }
  func.func @transform_2(%arg0: i32, %arg1: i32, %arg2: memref<1xi32, #tpu.memory_space<smem>>) -> (i32, i32) {
    %c0_i32 = arith.constant 0 : i32
    %c0_i32_0 = arith.constant 0 : i32
    %c0_i32_1 = arith.constant 0 : i32
    return %c0_i32, %c0_i32_0 : i32, i32
  }
  func.func @transform_3(%arg0: i32, %arg1: i32, %arg2: memref<1xi32, #tpu.memory_space<smem>>) -> (i32, i32) {
    %c0_i32 = arith.constant 0 : i32
    %c0_i32_0 = arith.constant 0 : i32
    %c0_i32_1 = arith.constant 0 : i32
    return %c0_i32, %c0_i32_0 : i32, i32
  }
  func.func @transform_4(%arg0: i32, %arg1: i32, %arg2: memref<1xi32, #tpu.memory_space<smem>>) -> (i32, i32, i32) {
    %c0_i32 = arith.constant 0 : i32
    %c0_i32_0 = arith.constant 0 : i32
    return %arg1, %arg0, %c0_i32 : i32, i32, i32
  }
  func.func @transform_5(%arg0: i32, %arg1: i32, %arg2: memref<1xi32, #tpu.memory_space<smem>>) -> (i32, i32, i32) {
    %c0_i32 = arith.constant 0 : i32
    %c0_i32_0 = arith.constant 0 : i32
    return %arg1, %arg0, %c0_i32 : i32, i32, i32
  }
}

</mosaic_0001>

<bundles_post_ra>
// kernel: ar_trajectory.1
= control target key start
LH: loop header
LB: loop body
LE: loop exit
PB: predicated region body
PF: predicated region fallthrough
CT: control target
= control target key end

     0   :  { %s1148_s0 = inlined_call_operand.<no memory space> [shape: s32[1], index: 0, kind: input, shape index: {}]   ;;  %s1149_s1 = inlined_call_operand.hbm [shape: f32[32,128], index: 1, kind: input, shape index: {}]   ;;  %s1150_s2 = inlined_call_operand.hbm [shape: f32[128,128], index: 2, kind: input, shape index: {}]   ;;  %s1151_s3 = inlined_call_operand.hbm [shape: f32[16,128], index: 3, kind: input, shape index: {}]   ;;  %s1152_s4 = inlined_call_operand.vmem [shape: f32[1,128], index: 4, kind: input, shape index: {}]   ;;  %s1153_s5 = inlined_call_operand.hbm [shape: f32[1,32,128], index: 5, kind: input, shape index: {}]   ;;  %s1154_s6 = inlined_call_operand.hbm [shape: f32[1,32,128], index: 6, kind: output, shape index: {}]  }
   0x1   :  { %1161 = sst [smem:[#allocation21_spill]] %s1150_s2 }
   0x2   :  { %1162 = sst [smem:[#allocation22_spill]] %s1151_s3 }
   0x3   :  { %11 = sst [smem:[#allocation4]] %s1148_s0 }
   0x4   :  { %12 = vsyncpa [#allocation6], 0 }
   0x5   :  { %14 = vsyncpa [#allocation6 + $0x1], 0 }
   0x6   :  { %15 = vsyncpa [#allocation9], 0 }
   0x7   :  { %16 = vsyncpa [#allocation12], 0 }
   0x8   :  { %18 = vsyncpa [#allocation12 + $0x1], 0 }
   0x9   :  { %19 = vsyncpa [#allocation7], 0 }
   0xa   :  { %21 = vsyncpa [#allocation7 + $0x1], 0  ;;  %s953_s23 = smov 0   ;;  %s955_s24 = smov 0  }
   0xb   :  { %s957_s25 = smov 0   ;;  %s959_s26 = smov 0  }
   0xc   :  { %s961_s27 = smov 0   ;;  %s963_s28 = smov 0  }
   0xd LB: > { %1163 = sst [smem:[#allocation18_spill]] %s903_s27  ;;  %s561_s0 = sadd.s32 4294967295, %s907_s28   ;;  %s907_s28 = sphi %s963_s28, %s27_s28   ;;  %s903_s27 = sphi %s961_s27, %s1179_s27   ;;  %s899_s26 = sphi %s959_s26, %s1178_s26   ;;  %s895_s25 = sphi %s957_s25, %s1182_s25   ;;  %s891_s24 = sphi %s955_s24, %s1181_s24   ;;  %s887_s23 = sphi %s953_s23, %s1180_s23  }
   0xe   : > { %s562_s29 = sadd.s32 4294967294, %s907_s28   ;;  %p59_p0 = scmp.ne.s32.totalorder %s891_s24, %s887_s23 }
   0xf   : > { %p987_p1 = scmp.eq.s32.totalorder %s561_s0, 0  ;;  %p991_p2 = scmp.eq.s32.totalorder %s561_s0, 1 }
  0x10   : > { %p182_p3 = scmp.eq.s32.totalorder %s562_s29, 1  ;;  %p563_p5 = scmp.ge.s32.totalorder %s907_s28, 1 }
  0x11   : > { %p997_p4 = por %p987_p1, %p59_p0  ;;  %p189_p7 = scmp.lt.s32.totalorder %s907_s28, 3 }
  0x12   : > { %p1002_p6 = por %p182_p3, %p59_p0  ;;  %s1168_s2 = sld [smem:[#allocation21_spill]] }
  0x13   : > { %p1010_p8 = pnand %p563_p5, %p189_p7  ;;  %s909_s14 = smov [#allocation8]  }
  0x14   : > { %s202_s15 = sshll.u32 %s909_s14, 4  ;;  %p566_p11 = scmp.ge.s32.totalorder %s907_s28, 2  ;;  %s203_s15 = int_to_ptr.vmem [resolvable:$true] %s202_s15 }
  0x15   : > { %p617_p9 = pneg %p1010_p8  ;;  %s1170_s3 = sld [smem:[#allocation22_spill]] }
  0x16   : > { %s1155_s19 = smov 128   ;;  %s1157_s20 = smov 8  }
  0x17   : > { %p618_p10 = pnand %p617_p9, %p987_p1  ;;  %s912_s21 = smov [#allocation10]  }
  0x18   : > { %s200_s12 = sshll.u32 %s1168_s2, 4  ;;  %s216_s22 = sshll.u32 %s912_s21, 4  ;;  %s201_s12 = int_to_ptr.hbm [resolvable:$true] %s200_s12  ;;  %s217_s22 = int_to_ptr.vmem [resolvable:$true] %s216_s22 }
  0x19   : > { %620 = dma.hbm_to_vmem [thread:$0]  (!%p618_p10), %s201_s12, 2048, %s203_s15, [#allocation9], %s1155_s19, %s1155_s19, %s1157_s20  }
  0x1a   : > { %s39_s0 = sadd.s32 1, %s903_s27  ;;  %s46_s29 = sadd.s32 1, %s895_s25 }
  0x1b   : > { %s214_s18 = sshll.u32 %s1170_s3, 4  ;;  %p41_p12 = scmp.ge.s32.totalorder %s39_s0, 2  ;;  %s215_s18 = int_to_ptr.hbm [resolvable:$true] %s214_s18 }
  0x1c   : > { %623 = dma.hbm_to_vmem [thread:$0]  (!%p618_p10), %s215_s18, 256, %s217_s22, [#allocation9], %s1155_s19, %s1155_s19, %s1157_s20  }
  0x1d   : > { %p53_p13 = scmp.ne.s32.totalorder %s895_s25, %s891_s24  ;;  %p54_p0 = scmp.eq.s32.totalorder %s907_s28, 0 }
  0x1e   : > { %p637_p3 = scmp.lt.s32.totalorder %s907_s28, 2  ;;  %s1184_s0 = smov (%p41_p12, %s39_s0), 0 }
  0x1f   : > { %1171 = sst [smem:[#allocation19_spill]] %s1184_s0  ;;  %p1036_p5 = por %p54_p0, %p53_p13 }
  0x20   : > { %p1042_p7 = por %p991_p2, %p53_p13  ;;  %s43_s12 = ssub.s32 %s903_s27, %s1184_s0 }
  0x21   : > { %s233_s14 = sand.u32 1, %s895_s25   ;;  %p44_p9 = scmp.eq.s32.totalorder %s43_s12, 0 }
  0x22   : > { %s567_s15 = sshll.u32 %s233_s14, 4  ;;  %s584_s16 = sshll.u32 %s903_s27, 4 }
  0x23   : > { %s1051_s17 = scalar_select %p44_p9, %s895_s25, %s46_s29  }
  0x24   : > { %s242_s22 = scalar_lea.hbm %s1149_s1, %s584_s16  ;;  %s237_s20 = scalar_lea.vmem [#allocation5], %s567_s15 }
  0x25   : > { %1174 = sst [smem:[#allocation20_spill]] %s1051_s17  ;;  %s243_s19 = sshll.u32 %s242_s22, 4  ;;  %s244_s19 = int_to_ptr.hbm [resolvable:$true] %s243_s19 }
  0x26   : > { %s245_s2 = sshll.u32 %s237_s20, 4  ;;  %p625_p2 = pnand %p637_p3, %p1036_p5  ;;  %s246_s2 = int_to_ptr.vmem [resolvable:$true] %s245_s2 }
  0x27   : > { %s266_s12 = scalar_lea.hbm %s1153_s5, %s584_s16  ;;  %s234_s27 = scalar_lea.sflag [#allocation6], %s233_s14 }
  0x28   : > { %s267_s0 = sshll.u32 %s266_s12, 4  ;;  %s1175_s29 = smov 8   ;;  %s268_s0 = int_to_ptr.hbm [resolvable:$true] %s267_s0 }
  0x29   : > { %s1176_s17 = smov 128   ;;  %s259_s18 = scalar_lea.vmem [#allocation11], %s567_s15 }
  0x2a   : > { %627 = dma.hbm_to_vmem [thread:$0]  (!%p625_p2), %s244_s19, 256, %s246_s2, %s234_s27, %s1176_s17, %s1176_s17, %s1175_s29  }
  0x2b   : > { %s269_s21 = sshll.u32 %s259_s18, 4  ;;  %s256_s20 = scalar_lea.sflag [#allocation12], %s233_s14  ;;  %s270_s21 = int_to_ptr.vmem [resolvable:$true] %s269_s21 }
  0x2c   : > { %630 = dma.hbm_to_vmem [thread:$0]  (!%p625_p2), %s268_s0, 256, %s270_s21, %s256_s20, %s1176_s17, %s1176_s17, %s1175_s29  }
  0x2d   : > { %281 = sbr.rel (%p1010_p8) target bundleno = 222 (0xde), region = 40  ;;  %s1072_s3 = sand.u32 (!%p1010_p8), 1, %s891_s24  }
  0x2e   : > { %s1075_s10 = sshll.u32 (!%p1010_p8), %s1072_s3, 4  ;;  %s284_s2 = scalar_lea.sflag (!%p1010_p8), [#allocation6], %s1072_s3 }
  0x2f   : > { %s287_s27 = scalar_lea.vmem (!%p1010_p8), [#allocation5], %s1075_s10 }
  0x32   : > { %870 = dma.done.wait (%p997_p4), %s284_s2, 256  }
  0x33   : > { %872 = vsyncadd (%p997_p4), %s284_s2, 4294967040 }
  0x34   : > { %874 = dma.done.wait (%p987_p1), [#allocation9], 2304  }
  0x35   : > { %876 = vsyncadd (%p987_p1), [#allocation9], 4294964992  ;;  %s304_s13 = scalar_lea.sflag [#allocation12], %s1072_s3  ;;  %s307_s19 = scalar_lea.vmem [#allocation11], %s1075_s10 }
  0x36   : > { %878 = dma.done.wait (%p997_p4), %s304_s13, 256  }
  0x37   : > { %880 = vsyncadd (%p997_p4), %s304_s13, 4294967040  ;;  %s370_s0 = sld [smem:[#allocation4]]  ;;  %v366_v0 = vld [vmem:[#allocation8 + $0x78] sm:$0xff]  ;;  %v365_v1 = vld [vmem:[#allocation8 + $0x70] sm:$0xff]  ;;  %s586_s8 = sshll.u32 %s899_s26, 4 }
  0x38   : > { %377 = vmatpush.msra.mxu0 %v366_v0  ;;  %587 = vmatpush.msra.mxu1 %v366_v0  ;;  %v364_v2 = vld [vmem:[#allocation8 + $0x68] sm:$0xff]  ;;  %v363_v3 = vld [vmem:[#allocation8 + $0x60] sm:$0xff]  ;;  %v362_v4 = vld [vmem:[#allocation8 + $0x58] sm:$0xff]  ;;  %s427_s22 = scalar_lea.hbm %s1154_s6, %s586_s8  ;;  %s339_s7 = scalar_lea.vmem [#allocation13], %s1075_s10 }
  0x39   : > { %v361_v5 = vld [vmem:[#allocation8 + $0x50] sm:$0xff]  ;;  %v360_v6 = vld [vmem:[#allocation8 + $0x48] sm:$0xff]  ;;  %v359_v7 = vld [vmem:[#allocation8 + $0x40] sm:$0xff]  ;;  %s428_s12 = sshll.u32 %s339_s7, 4  ;;  %s430_s26 = sshll.u32 %s427_s22, 4  ;;  %s429_s12 = int_to_ptr.vmem [resolvable:$true] %s428_s12  ;;  %s431_s26 = int_to_ptr.hbm [resolvable:$true] %s430_s26 }
  0x3a   : > { %378 = vmatpush.msra.mxu0 %v365_v1  ;;  %588 = vmatpush.msra.mxu1 %v365_v1  ;;  %v358_v8 = vld [vmem:[#allocation8 + $0x38] sm:$0xff]  ;;  %v357_v9 = vld [vmem:[#allocation8 + $0x30] sm:$0xff]  ;;  %v356_v10 = vld [vmem:[#allocation8 + $0x28] sm:$0xff]  ;;  %s414_s29 = scalar_lea.sflag [#allocation7], %s1072_s3  ;;  %s831_s18 = sshra.s32 %s431_s26, 4  ;;  %s832_s18 = int_to_ptr.hbm [resolvable:$true] %s831_s18 }
  0x3b   : > { %v355_v11 = vld [vmem:[#allocation8 + $0x20] sm:$0xff]  ;;  %v354_v12 = vld [vmem:[#allocation8 + $0x18] sm:$0xff]  ;;  %v353_v13 = vld [vmem:[#allocation8 + $0x10] sm:$0xff]  ;;  %s833_s21 = scalar_lea.hbm %s832_s18, 16  ;;  %s837_s2 = scalar_lea.hbm %s1154_s6, 32 }
  0x3c   : > { %379 = vmatpush.msra.mxu0 %v364_v2  ;;  %589 = vmatpush.msra.mxu1 %v364_v2  ;;  %v352_v14 = vld [vmem:[#allocation8 + $0x8] sm:$0xff]  ;;  %v351_v15 = vld [vmem:[#allocation8] sm:$0xff]  ;;  %p834_p1 = scmp.ne.s32.totalorder %s832_s18, %s833_s21  ;;  %p838_p12 = scmp.lt.s32.totalorder %s832_s18, %s1154_s6 }
  0x3d   : > { %p372_p8 = scmp.lt.s32.totalorder %s370_s0, 15  ;;  %v347_v16 = vld [vmem:[%s287_s27] sm:$0xff]  ;;  %v348_v17 = vld [vmem:[%s287_s27 + $0x8] sm:$0xff]  ;;  %v400_v19 = vld [vmem:[%s307_s19] sm:$0xff]  ;;  %p839_p13 = scmp.lt.s32.totalorder %s837_s2, %s833_s21 }
  0x3e   : > { %380 = vmatpush.msra.mxu0 %v363_v3  ;;  %590 = vmatpush.msra.mxu1 %v363_v3  ;;  %v696_v18 = vld [vmem:[%s1152_s4] ss:$0 sm:$0xff]  ;;  %v401_v20 = vld [vmem:[%s307_s19 + $0x8] sm:$0xff]  ;;  %p835_p4 = pnand %p834_p1, %p1042_p7 }
  0x3f   : > { %s1186_s0 = smov (!%p372_p8, %s370_s0), 15  ;;  %v405_v22 = vmul.f32 %v696_v18, %v400_v19  ;;  %v406_v23 = vmul.f32 %v696_v18, %v401_v20  ;;  %p840_p0 = por %p839_p13, %p838_p12 }
  0x40   : > { %s374_s30 = scalar_lea.vmem [#allocation10], %s1186_s0  ;;  %381 = vmatpush.msra.mxu0 %v362_v4  ;;  %591 = vmatpush.msra.mxu1 %v362_v4  ;;  %p836_p10 = pneg %p835_p4 }
  0x41   : > { %v695_v21 = vld [vmem:[%s374_s30] ss:$0 sm:$0xff] }
  0x42   : > { %382 = vmatpush.msra.mxu0 %v361_v5  ;;  %592 = vmatpush.msra.mxu1 %v361_v5  ;;  %p841_p3 = pnand %p840_p0, %p836_p10 }
  0x44   : > { %383 = vmatpush.msra.mxu0 %v360_v6  ;;  %593 = vmatpush.msra.mxu1 %v360_v6 }
  0x46   : > { %384 = vmatpush.msra.mxu0 %v359_v7  ;;  %594 = vmatpush.msra.mxu1 %v359_v7 }
  0x48   : > { %385 = vmatpush.msra.mxu0 %v358_v8  ;;  %595 = vmatpush.msra.mxu1 %v358_v8 }
  0x4a   : > { %386 = vmatpush.msra.mxu0 %v357_v9  ;;  %596 = vmatpush.msra.mxu1 %v357_v9 }
  0x4c   : > { %387 = vmatpush.msra.mxu0 %v356_v10  ;;  %597 = vmatpush.msra.mxu1 %v356_v10 }
  0x4e   : > { %388 = vmatpush.msra.mxu0 %v355_v11  ;;  %598 = vmatpush.msra.mxu1 %v355_v11 }
  0x50   : > { %389 = vmatpush.msra.mxu0 %v354_v12  ;;  %599 = vmatpush.msra.mxu1 %v354_v12 }
  0x52   : > { %390 = vmatpush.msra.mxu0 %v353_v13  ;;  %600 = vmatpush.msra.mxu1 %v353_v13 }
  0x54   : > { %391 = vmatpush.msra.mxu0 %v352_v14  ;;  %601 = vmatpush.msra.mxu1 %v352_v14 }
  0x56   : > { %392 = vmatpush.msra.mxu0 %v351_v15  ;;  %602 = vmatpush.msra.mxu1 %v351_v15 }
  0x57   : > { %393 = vmatmul.f32.vlgmr.msra.gmra.mxu0 %v347_v16  ;;  %396 = vmatmul.f32.vlgmr.msra.gmra.mxu1 %v348_v17 }
  0xd4   : > { %v394_v24 = vpop.f32.mrf.mxu0  ;;  %v397_v25 = vpop.f32.mrf.mxu1 }
  0xd5   : > { %v395_v26 = vadd.f32 %v695_v21, %v394_v24  ;;  %v398_v27 = vadd.f32 %v695_v21, %v397_v25 }
  0xd7   : > { %v407_v28 = vadd.f32 %v405_v22, %v395_v26  ;;  %v408_v29 = vadd.f32 %v406_v23, %v398_v27 }
  0xd9   : > { %409 = vst [vmem:[%s339_s7] sm:$0xff] %v407_v28 }
  0xda   : > { %410 = vst [vmem:[%s339_s7 + $0x8] sm:$0xff] %v408_v29 }
  0xdb   : > { %844 = shalt.err (!%p841_p3)
}
  0xdc   : > { %s913_s3 = smov 128   ;;  %s914_s19 = smov 8  }
  0xdd   : > { %615 = dma.vmem_to_hbm [thread:$0]  (%p1042_p7), %s429_s12, 256, %s431_s26, %s414_s29, %s913_s3, %s913_s3, %s914_s19  }
  0xde PF: > { %s445_s0 = sand.u32 1, %s887_s23   ;;  %p632_p5 = pnand %p566_p11, %p1002_p6 }
  0xdf   : > { %s446_s30 = scalar_lea.sflag [#allocation7], %s445_s0 }
  0xe0   : > { %p633_p9 = pneg %p632_p5 }
  0xe2   : > { %882 = dma.done.wait (%p633_p9), %s446_s30, 256  }
  0xe3   : > { %884 = vsyncadd (%p633_p9), %s446_s30, 4294967040  ;;  %s27_s28 = sadd.s32 1, %s907_s28   ;;  %s1177_s8 = sld [smem:[#allocation20_spill]] }
  0xe4   : > { %p24_p2 = scmp.ge.s32.totalorder %s27_s28, 4   ;;  %s1178_s26 = sld [smem:[#allocation18_spill]] }
  0xe5   : > { %s1179_s27 = sld [smem:[#allocation19_spill]]  ;;  %s1180_s23 = smov %s891_s24 }
  0xe6   : > { %s1181_s24 = smov %s895_s25  ;;  %26 = sbr.rel (!%p24_p2) target bundleno = 13 (0xd), region = 111 }
  0xe9   : > { %s1182_s25 = smov %s1177_s8 }
  0xeb   :  { %452 = vsyncpa [#allocation6], 1 }
  0xec   :  { %454 = vsyncpa [#allocation6 + $0x1], 1 }
  0xed   :  { %455 = vsyncpa [#allocation9], 1 }
  0xee   :  { %456 = vsyncpa [#allocation12], 1 }
  0xef   :  { %458 = vsyncpa [#allocation12 + $0x1], 1 }
  0xf0   :  { %459 = vsyncpa [#allocation7], 1 }
  0xf1   :  { %461 = vsyncpa [#allocation7 + $0x1], 1 }

</bundles_post_ra>
